<compile_context>
chip_gen: v6e
topology: v6e:2x2x1
jax: 0.10.0
libtpu: 0.0.40
codegen_flags: <defaults>
</compile_context>

<pallas_src>
import functools

import jax
import jax.numpy as jnp
from jax.experimental import pallas as pl
from jax.experimental.pallas import tpu as pltpu

_LANE = 128          # lane width (last-dim tiling)
_SUBLANE = 16        # bf16 sublane packing for the batch dim


def _round_up(x, m):
    return ((x + m - 1) // m) * m


def _vmem_budget_bytes():
    """VMEM this kernel is allowed to request (per TensorCore).

    ~75% of physical VMEM, capped at 96 MiB: <=~96 MiB on v5e/v6e (128 MiB
    physical) and <=~48 MiB on v7x (64 MiB physical), leaving headroom for
    compiler-internal scratch.
    """
    cap = 64 * 1024 * 1024  # conservative default = v7x per-TC VMEM
    try:
        cap = int(pltpu.get_tpu_info().vmem_capacity_bytes)
    except Exception:
        pass
    return min((cap * 3) // 4, 96 * 1024 * 1024)


_VMEM_BUDGET = _vmem_budget_bytes()


def _grid_invariant_spec(shape):
    """BlockSpec for a weight/bias that is identical for every batch tile.

    Single-buffered: the block index is (0, 0) for every grid step, so the
    default double-buffering would only double resident VMEM.
    """
    index_map = lambda i: (0,) * len(shape)
    try:
        return pl.BlockSpec(shape, index_map, pipeline_mode=pl.Buffered(1))
    except Exception:  # older Pallas without pipeline_mode / Buffered
        return pl.BlockSpec(shape, index_map)


def _choose_batch_tile(batch, per_row_bytes, fixed_bytes, budget):
    """Largest tile that fits VMEM, minimizes padding, prefers >=2 tiles."""
    best_tb, best_score = None, None
    for tb in (256, 128, 64, 32, 16):
        if fixed_bytes + tb * per_row_bytes > budget:
            continue
        b_pad = _round_up(batch, tb)
        n_tiles = b_pad // tb
        # (padding waste, single-tile penalty for v7x megacore, prefer big tb)
        score = (b_pad - batch, 0 if n_tiles >= 2 else 1, -tb)
        if best_score is None or score < best_score:
            best_tb, best_score = tb, score
    return best_tb if best_tb is not None else 16


def _make_fused_mlp_kernel(num_layers):
    """Kernel args: (x_ref, w0_ref, b0_ref, w1_ref, b1_ref, ..., o_ref).

    All feature dims are pre-padded to multiples of 128, so every matmul is a
    full-width MXU op and every store is an unmasked lane-dense vst.
    """

    def kernel(x_ref, *refs):
        o_ref = refs[-1]
        # x arrives in f32 via the tile DMA; cast to bf16 on the VPU here
        # (no separate host-side cast pass).
        h = x_ref[...].astype(jnp.bfloat16)
        acc = None
        for li in range(num_layers):
            w = refs[2 * li][...]          # bf16 (K_pad, N_pad), VMEM-resident
            b = refs[2 * li + 1][...]      # f32  (1, N_pad)
            acc = jnp.dot(h, w, preferred_element_type=jnp.float32)  # MXU
            acc = jnp.maximum(acc + b, 0.0)                          # f32 epilogue
            if li < num_layers - 1:
                h = acc.astype(jnp.bfloat16)                         # stays in VMEM/vregs
        o_ref[...] = acc.astype(o_ref.dtype)

    return kernel


@functools.partial(jax.jit, static_argnames=("out_features", "out_dtype"))
def fused_mlp_forward(x, padded_params, *, out_features, out_dtype=jnp.float32):
    """y = relu(...relu(relu(x @ W0 + b0) @ W1 + b1)...) in one pallas_call.

    x:             (B, K0) float32.
    padded_params: tuple of (W_pad bf16 (K_pad, N_pad), b_pad f32 (1, N_pad)),
                   padded/cast once at construction time.
    """
    B, K0 = x.shape
    num_layers = len(padded_params)
    assert num_layers >= 1

    k0_pad = _round_up(K0, _LANE)
    n_last_pad = padded_params[-1][0].shape[1]
    widest = max([k0_pad] + [w.shape[1] for w, _ in padded_params])
    out_itemsize = jnp.dtype(out_dtype).itemsize

    # --- VMEM accounting: drives tb and vmem_limit_bytes --------------------
    weight_bytes = sum(w.size * w.dtype.itemsize for w, _ in padded_params)  # x1 buffer
    bias_bytes = sum(b.size * b.dtype.itemsize for _, b in padded_params)    # x1 buffer
    fixed_bytes = weight_bytes + bias_bytes
    per_row_bytes = (
        2 * k0_pad * 4                 # x tile, f32, double-buffered
        + 2 * n_last_pad * out_itemsize  # out tile, double-buffered
        + 2 * widest * 4               # live f32 acc + bf16 h temporaries
    )
    if fixed_bytes > _VMEM_BUDGET:
        # TODO(synk): layers this wide need a K/N-tiled grid with a VMEM f32
        # accumulator (weights streamed via double-buffered DMA, not resident).
        raise NotImplementedError("padded weights exceed the VMEM budget")

    tb = _choose_batch_tile(B, per_row_bytes, fixed_bytes, _VMEM_BUDGET)
    b_pad = _round_up(B, tb)

    vmem_needed = int(1.2 * (fixed_bytes + tb * per_row_bytes))
    vmem_limit = min(_VMEM_BUDGET, max(vmem_needed, 16 * 1024 * 1024))

    # --- pad x only when shapes require it (fused under jit) ---------------
    if (b_pad, k0_pad) != (B, K0):
        x_in = jnp.pad(x, ((0, b_pad - B), (0, k0_pad - K0)))
    else:
        x_in = x

    args = [x_in]
    in_specs = [pl.BlockSpec((tb, k0_pad), lambda i: (i, 0))]
    for w, b in padded_params:
        args.append(w)
        args.append(b)
        in_specs.append(_grid_invariant_spec(w.shape))   # single-buffered
        in_specs.append(_grid_invariant_spec(b.shape))   # single-buffered

    out = pl.pallas_call(
        _make_fused_mlp_kernel(num_layers),
        out_shape=jax.ShapeDtypeStruct((b_pad, n_last_pad), out_dtype),
        grid_spec=pltpu.PrefetchScalarGridSpec(
            num_scalar_prefetch=0,
            grid=(b_pad // tb,),
            in_specs=in_specs,
            out_specs=pl.BlockSpec((tb, n_last_pad), lambda i: (i, 0)),
        ),
        compiler_params=pltpu.CompilerParams(
            # Batch tiles are independent -> shard across TCs on v7x megacore.
            dimension_semantics=("parallel",),
            vmem_limit_bytes=vmem_limit,
        ),
    )(*args)

    # Slice off batch/feature padding.
    return out[:B, :out_features]


class ReLuMLP:
    """JAX/Pallas equivalent of the PyTorch ReLuMLP module.

    For layer sizes [l0, l1, ..., lk] it builds k Linear layers, each followed
    by a ReLU (the PyTorch module applies ReLU after EVERY linear, including
    the last one).
    """

    def __init__(self, layers, key):
        self.params = []
        padded = []
        for i in range(len(layers) - 1):
            fan_in, fan_out = layers[i], layers[i + 1]
            key, wk, bk = jax.random.split(key, 3)
            # Mimic PyTorch's default U(-1/sqrt(fan_in), 1/sqrt(fan_in)).
            bound = 1.0 / (fan_in ** 0.5)
            w = jax.random.uniform(wk, (fan_in, fan_out), jnp.float32,
                                   minval=-bound, maxval=bound)
            b = jax.random.uniform(bk, (1, fan_out), jnp.float32,
                                   minval=-bound, maxval=bound)
            self.params.append((w, b))

            # Pad + cast ONCE here (not per forward call): bf16 weights
            # (K_pad, N_pad), f32 biases (1, N_pad), lane-dense multiples of 128.
            kp, npad = _round_up(fan_in, _LANE), _round_up(fan_out, _LANE)
            wp = jnp.zeros((kp, npad), jnp.bfloat16).at[:fan_in, :fan_out].set(
                w.astype(jnp.bfloat16))
            bp = jnp.zeros((1, npad), jnp.float32).at[:, :fan_out].set(b)
            padded.append((wp, bp))

        self._padded = tuple(padded)
        self._out_features = layers[-1]

    def __call__(self, x):
        return fused_mlp_forward(x, self._padded,
                                 out_features=self._out_features,
                                 out_dtype=x.dtype)

    def reference_f32(self, x):
        # Pure-f32 JAX reference (PyTorch semantics).
        for w, b in self.params:
            x = jnp.maximum(x @ w + b, 0.0)
        return x

    def reference_bf16(self, x):
        # Reference mirroring the kernel's quantization: bf16 operands,
        # f32 accumulation, f32 bias-add + ReLU.
        h = x.astype(jnp.bfloat16)
        out = None
        for li, (w, b) in enumerate(self.params):
            out = jnp.dot(h, w.astype(jnp.bfloat16),
                          preferred_element_type=jnp.float32)
            out = jnp.maximum(out + b, 0.0)
            if li < len(self.params) - 1:
                h = out.astype(jnp.bfloat16)
        return out.astype(x.dtype)


if __name__ == "__main__":
    key = jax.random.PRNGKey(0)
    key, xk1, xk2, mk = jax.random.split(key, 4)

    layers = [16, 32, 8]   # nn.Linear(16,32)+ReLU, nn.Linear(32,8)+ReLU
    model = ReLuMLP(layers, mk)

    # Small single-tile batch and a multi-tile batch (exercises the grid).
    for xk, batch in ((xk1, 8), (xk2, 48)):
        x = jax.random.normal(xk, (batch, layers[0]), jnp.float32)
        out = jax.block_until_ready(model(x))
        assert out.shape == (batch, layers[-1])

        # Tight check vs a reference mirroring the kernel's bf16/f32 numerics.
        ref_bf16 = model.reference_bf16(x)
        assert jnp.allclose(out, ref_bf16, atol=1e-3, rtol=1e-3), (
            float(jnp.max(jnp.abs(out - ref_bf16))))

        # Loose check vs pure-f32 PyTorch semantics (bf16 MXU tolerance).
        ref_f32 = model.reference_f32(x)
        assert jnp.allclose(out, ref_f32, atol=3e-2, rtol=3e-2), (
            float(jnp.max(jnp.abs(out - ref_f32))))

    print("KERNEL_OK")
</pallas_src>

<mosaic_0001>
module attributes {stable_mosaic.version = 11 : i64} {
  func.func @kernel(%arg0: i32, %arg1: memref<16x128xf32, #tpu.memory_space<vmem>>, %arg2: memref<128x128xbf16, #tpu.memory_space<vmem>>, %arg3: memref<1x128xf32, #tpu.memory_space<vmem>>, %arg4: memref<128x128xbf16, #tpu.memory_space<vmem>>, %arg5: memref<1x128xf32, #tpu.memory_space<vmem>>, %arg6: memref<16x128xf32, #tpu.memory_space<vmem>>) attributes {dimension_semantics = [#tpu.dimension_semantics<parallel>], iteration_bounds = array<i64: 1>, scalar_prefetch = 0 : i64, scratch_operands = 0 : i64, tpu.core_type = #tpu.core_type<tc>, window_params = [{transform_indices = @transform_0, window_bounds = array<i64: 16, 128>}, {pipeline_mode = #tpu.pipeline_mode<synchronous>, transform_indices = @transform_1, window_bounds = array<i64: 128, 128>}, {pipeline_mode = #tpu.pipeline_mode<synchronous>, transform_indices = @transform_2, window_bounds = array<i64: 1, 128>}, {pipeline_mode = #tpu.pipeline_mode<synchronous>, transform_indices = @transform_3, window_bounds = array<i64: 128, 128>}, {pipeline_mode = #tpu.pipeline_mode<synchronous>, transform_indices = @transform_4, window_bounds = array<i64: 1, 128>}, {transform_indices = @transform_5, window_bounds = array<i64: 16, 128>}]} {
    %c0 = arith.constant 0 : index
    %c0_0 = arith.constant 0 : index
    %0 = vector.load %arg1[%c0, %c0_0] : memref<16x128xf32, #tpu.memory_space<vmem>>, vector<16x128xf32>
    %1 = arith.truncf %0 : vector<16x128xf32> to vector<16x128xbf16>
    %c0_1 = arith.constant 0 : index
    %c0_2 = arith.constant 0 : index
    %2 = vector.load %arg2[%c0_1, %c0_2] : memref<128x128xbf16, #tpu.memory_space<vmem>>, vector<128x128xbf16>
    %c0_3 = arith.constant 0 : index
    %c0_4 = arith.constant 0 : index
    %3 = vector.load %arg3[%c0_3, %c0_4] : memref<1x128xf32, #tpu.memory_space<vmem>>, vector<1x128xf32>
    %cst = arith.constant dense<0.000000e+00> : vector<16x128xf32>
    %4 = tpu.matmul %1, %2, %cst {dimension_numbers = #tpu.dot_dimension_numbers<[1], [0], [0], [1], [0, 0, 1, 1], [], []>} : vector<16x128xbf16>, vector<128x128xbf16>, vector<16x128xf32> -> vector<16x128xf32>
    %5 = vector.broadcast %3 : vector<1x128xf32> to vector<16x128xf32>
    %6 = arith.addf %4, %5 : vector<16x128xf32>
    %cst_5 = arith.constant 0.000000e+00 : f32
    %7 = vector.broadcast %cst_5 : f32 to vector<16x128xf32>
    %8 = arith.maximumf %6, %7 : vector<16x128xf32>
    %9 = arith.truncf %8 : vector<16x128xf32> to vector<16x128xbf16>
    %c0_6 = arith.constant 0 : index
    %c0_7 = arith.constant 0 : index
    %10 = vector.load %arg4[%c0_6, %c0_7] : memref<128x128xbf16, #tpu.memory_space<vmem>>, vector<128x128xbf16>
    %c0_8 = arith.constant 0 : index
    %c0_9 = arith.constant 0 : index
    %11 = vector.load %arg5[%c0_8, %c0_9] : memref<1x128xf32, #tpu.memory_space<vmem>>, vector<1x128xf32>
    %cst_10 = arith.constant dense<0.000000e+00> : vector<16x128xf32>
    %12 = tpu.matmul %9, %10, %cst_10 {dimension_numbers = #tpu.dot_dimension_numbers<[1], [0], [0], [1], [0, 0, 1, 1], [], []>} : vector<16x128xbf16>, vector<128x128xbf16>, vector<16x128xf32> -> vector<16x128xf32>
    %13 = vector.broadcast %11 : vector<1x128xf32> to vector<16x128xf32>
    %14 = arith.addf %12, %13 : vector<16x128xf32>
    %cst_11 = arith.constant 0.000000e+00 : f32
    %15 = vector.broadcast %cst_11 : f32 to vector<16x128xf32>
    %16 = arith.maximumf %14, %15 : vector<16x128xf32>
    %c0_12 = arith.constant 0 : index
    %c0_13 = arith.constant 0 : index
    %17 = vector.load %arg6[%c0_12, %c0_13] : memref<16x128xf32, #tpu.memory_space<vmem>>, vector<16x128xf32>
    tpu.vector_store %arg6[%c0_12, %c0_13], %16 {strides = array<i32>} : memref<16x128xf32, #tpu.memory_space<vmem>>, vector<16x128xf32>,
    return
  }
  func.func @transform_0(%arg0: i32) -> (i32, i32) {
    %c0_i32 = arith.constant 0 : i32
    %c0_i32_0 = arith.constant 0 : i32
    return %arg0, %c0_i32 : i32, i32
  }
  func.func @transform_1(%arg0: i32) -> (i32, i32) {
    %c0_i32 = arith.constant 0 : i32
    %c0_i32_0 = arith.constant 0 : i32
    %c0_i32_1 = arith.constant 0 : i32
    return %c0_i32, %c0_i32_0 : i32, i32
  }
  func.func @transform_2(%arg0: i32) -> (i32, i32) {
    %c0_i32 = arith.constant 0 : i32
    %c0_i32_0 = arith.constant 0 : i32
    %c0_i32_1 = arith.constant 0 : i32
    return %c0_i32, %c0_i32_0 : i32, i32
  }
  func.func @transform_3(%arg0: i32) -> (i32, i32) {
    %c0_i32 = arith.constant 0 : i32
    %c0_i32_0 = arith.constant 0 : i32
    %c0_i32_1 = arith.constant 0 : i32
    return %c0_i32, %c0_i32_0 : i32, i32
  }
  func.func @transform_4(%arg0: i32) -> (i32, i32) {
    %c0_i32 = arith.constant 0 : i32
    %c0_i32_0 = arith.constant 0 : i32
    %c0_i32_1 = arith.constant 0 : i32
    return %c0_i32, %c0_i32_0 : i32, i32
  }
  func.func @transform_5(%arg0: i32) -> (i32, i32) {
    %c0_i32 = arith.constant 0 : i32
    %c0_i32_0 = arith.constant 0 : i32
    return %arg0, %c0_i32 : i32, i32
  }
}

</mosaic_0001>

<bundles_post_ra>
// kernel: fused_mlp_forward.1
= control target key start
LH: loop header
LB: loop body
LE: loop exit
PB: predicated region body
PF: predicated region fallthrough
CT: control target
= control target key end

     0   :  { %10 = vsyncpa [#allocation3], 0  ;;  %s491_s0 = inlined_call_operand.vmem [shape: f32[16,128], index: 0, kind: input, shape index: {}]   ;;  %s492_s1 = inlined_call_operand.hbm [shape: bf16[128,128], index: 1, kind: input, shape index: {}]   ;;  %s493_s2 = inlined_call_operand.vmem [shape: f32[1,128], index: 2, kind: input, shape index: {}]   ;;  %s494_s3 = inlined_call_operand.hbm [shape: bf16[128,128], index: 3, kind: input, shape index: {}]   ;;  %s495_s4 = inlined_call_operand.vmem [shape: f32[1,128], index: 4, kind: input, shape index: {}]   ;;  %s496_s5 = inlined_call_operand.vmem [shape: f32[16,128], index: 5, kind: output, shape index: {}]  }
   0x1   :  { %11 = vsyncpa [#allocation5], 0  ;;  %s431_s18 = smov [#allocation2]  }
   0x2   :  { %s19_s19 = sshll.u32 %s431_s18, 4  ;;  %s20_s19 = int_to_ptr.vmem [resolvable:$true] %s19_s19 }
   0x3   :  { %s395_s20 = scalar_lea.vmem %s20_s19, 1024  ;;  %p400_p1 = scmp.lt.s32.totalorder %s20_s19, %s20_s19 }
   0x4   :  { %p396_p0 = scmp.ne.s32.totalorder %s20_s19, %s395_s20  ;;  %p401_p2 = scmp.lt.s32.totalorder %s395_s20, %s395_s20 }
   0x6   :  { %p402_p3 = por %p401_p2, %p400_p1 }
   0x8   :  { %p403_p4 = pnand %p402_p3, %p396_p0 }
   0xa   :  { %406 = shalt.err (!%p403_p4)
}
   0xb   :  { %s432_s21 = smov 64   ;;  %s433_s22 = smov 4  }
   0xc   :  { %25 = dma.hbm_to_vmem [thread:$0]  %s492_s1, 1024, %s20_s19, [#allocation3], %s432_s21, %s432_s21, %s433_s22  }
   0xd   :  { %s434_s25 = smov [#allocation4]  }
   0xe   :  { %s33_s26 = sshll.u32 %s434_s25, 4  ;;  %s34_s26 = int_to_ptr.vmem [resolvable:$true] %s33_s26 }
   0xf   :  { %s415_s27 = scalar_lea.vmem %s34_s26, 1024  ;;  %p420_p6 = scmp.lt.s32.totalorder %s34_s26, %s34_s26 }
  0x10   :  { %p416_p5 = scmp.ne.s32.totalorder %s34_s26, %s415_s27  ;;  %p421_p7 = scmp.lt.s32.totalorder %s415_s27, %s415_s27 }
  0x12   :  { %p422_p8 = por %p421_p7, %p420_p6 }
  0x14   :  { %p423_p9 = pnand %p422_p8, %p416_p5 }
  0x16   :  { %426 = shalt.err (!%p423_p9)
}
  0x17   :  { %39 = dma.hbm_to_vmem [thread:$0]  %s494_s3, 1024, %s34_s26, [#allocation5], %s432_s21, %s432_s21, %s433_s22  }
  0x18   :  { %427 = dma.done.wait [#allocation3], 1024  }
  0x19   :  { %428 = vsyncadd [#allocation3], 4294966272 }
  0x1a   :  { %429 = dma.done.wait [#allocation5], 1024  }
  0x1b   :  { %430 = vsyncadd [#allocation5], 4294966272  ;;  %v435_v0 = vmov 0.0   ;;  %vm436_vm0 = vmmov 0   ;;  %v371_v1 = vld [vmem:[#allocation2 + $0x38] sm:$0xff]   ;;  %v372_v2 = vld [vmem:[#allocation2 + $0x30] sm:$0xff]  }
  0x1c   :  { %325 = vmatprep.subr.bf16.mxu0 %v435_v0  ;;  %341 = vmatprep.mubr.msk.bf16.mxu0 %vm436_vm0, %v435_v0  ;;  %v373_v3 = vld [vmem:[#allocation2 + $0x28] sm:$0xff]   ;;  %v379_v4 = vld [vmem:[#allocation4 + $0x38] sm:$0xff]   ;;  %v374_v5 = vld [vmem:[#allocation2 + $0x20] sm:$0xff]  }
  0x1d   :  { %345 = vmatprep.subr.bf16.mxu1 %v435_v0  ;;  %361 = vmatprep.mubr.msk.bf16.mxu1 %vm436_vm0, %v435_v0  ;;  %v380_v6 = vld [vmem:[#allocation4 + $0x30] sm:$0xff]   ;;  %v375_v7 = vld [vmem:[#allocation2 + $0x18] sm:$0xff]   ;;  %v381_v8 = vld [vmem:[#allocation4 + $0x28] sm:$0xff]  }
  0x1e   :  { %326 = vmatpush3.bf16.msra.mxu0 %v371_v1  ;;  %346 = vmatpush3.bf16.msra.mxu1 %v379_v4  ;;  %v376_v9 = vld [vmem:[#allocation2 + $0x10] sm:$0xff]   ;;  %v382_v10 = vld [vmem:[#allocation4 + $0x20] sm:$0xff]   ;;  %v377_v11 = vld [vmem:[#allocation2 + $0x8] sm:$0xff]  }
  0x1f   :  { %327 = vmatprep.subr.bf16.mxu0 %v435_v0  ;;  %347 = vmatprep.subr.bf16.mxu1 %v435_v0  ;;  %v383_v12 = vld [vmem:[#allocation4 + $0x18] sm:$0xff]   ;;  %v378_v13 = vld [vmem:[#allocation2] sm:$0xff]   ;;  %v50_v15 = vld [vmem:[%s491_s0 + $0x8] sm:$0xff] }
  0x20   :  { %v49_v14 = vld [vmem:[%s491_s0] sm:$0xff]  ;;  %v384_v17 = vld [vmem:[#allocation4 + $0x10] sm:$0xff]   ;;  %v385_v18 = vld [vmem:[#allocation4 + $0x8] sm:$0xff]  }
  0x21   :  { %v51_v16 = vpack.c.bf16 %v50_v15, %v49_v14  ;;  %v386_v19 = vld [vmem:[#allocation4] sm:$0xff]  }
  0x22   :  { %328 = vmatpush3.bf16.msra.mxu0 %v372_v2  ;;  %348 = vmatpush3.bf16.msra.mxu1 %v380_v6  ;;  %v289_v20 = vld [vmem:[%s493_s2] ss:$0 sm:$0xff] }
  0x23   :  { %329 = vmatprep.subr.bf16.mxu0 %v435_v0  ;;  %349 = vmatprep.subr.bf16.mxu1 %v435_v0  ;;  %v298_v30 = vld [vmem:[%s495_s4] ss:$0 sm:$0xff] }
  0x26   :  { %330 = vmatpush3.bf16.msra.mxu0 %v373_v3  ;;  %350 = vmatpush3.bf16.msra.mxu1 %v381_v8 }
  0x27   :  { %331 = vmatprep.subr.bf16.mxu0 %v435_v0  ;;  %351 = vmatprep.subr.bf16.mxu1 %v435_v0 }
  0x2a   :  { %332 = vmatpush3.bf16.msra.mxu0 %v374_v5  ;;  %352 = vmatpush3.bf16.msra.mxu1 %v382_v10 }
  0x2b   :  { %333 = vmatprep.subr.bf16.mxu0 %v435_v0  ;;  %353 = vmatprep.subr.bf16.mxu1 %v435_v0 }
  0x2e   :  { %334 = vmatpush3.bf16.msra.mxu0 %v375_v7  ;;  %354 = vmatpush3.bf16.msra.mxu1 %v383_v12 }
  0x2f   :  { %335 = vmatprep.subr.bf16.mxu0 %v435_v0  ;;  %355 = vmatprep.subr.bf16.mxu1 %v435_v0 }
  0x32   :  { %336 = vmatpush3.bf16.msra.mxu0 %v376_v9  ;;  %356 = vmatpush3.bf16.msra.mxu1 %v384_v17 }
  0x33   :  { %337 = vmatprep.subr.bf16.mxu0 %v435_v0  ;;  %357 = vmatprep.subr.bf16.mxu1 %v435_v0 }
  0x36   :  { %338 = vmatpush3.bf16.msra.mxu0 %v377_v11  ;;  %358 = vmatpush3.bf16.msra.mxu1 %v385_v18 }
  0x37   :  { %339 = vmatprep.subr.bf16.mxu0 %v435_v0  ;;  %359 = vmatprep.subr.bf16.mxu1 %v435_v0 }
  0x3a   :  { %340 = vmatpush3.bf16.msra.mxu0 %v378_v13  ;;  %360 = vmatpush3.bf16.msra.mxu1 %v386_v19 }
  0x3d   :  { %342 = vmatmul.mubr.bf16.vlgmr.msra.gmra.mxu0 %v51_v16 }
  0xfd   :  { %v157_v21 = vpop.f32.mrf.mxu0 }
  0xfe   :  { %v158_v23 = vadd.f32 %v289_v20, %v157_v21 }
  0xff   :  { %v343_v22 = vpop.f32.mrf.mxu0 }
 0x100   :  { %v164_v27 = vmax.f32 %v158_v23, 0.0 }
 0x101   :  { %v160_v24 = vpop.f32.mrf.mxu0 }
 0x102   :  { %v161_v25 = vadd.f32 %v289_v20, %v160_v24 }
 0x103   :  { %v344_v26 = vpop.f32.mrf.mxu0 }
 0x104   :  { %v165_v28 = vmax.f32 %v161_v25, 0.0 }
 0x106   :  { %v166_v29 = vpack.c.bf16 %v165_v28, %v164_v27 }
 0x108   :  { %362 = vmatmul.mubr.bf16.vlgmr.msra.gmra.mxu1 %v166_v29 }
 0x1c8   :  { %v272_v31 = vpop.f32.mrf.mxu1 }
 0x1c9   :  { %v273_v32 = vadd.f32 %v298_v30, %v272_v31 }
 0x1ca   :  { %v363_v33 = vpop.f32.mrf.mxu1 }
 0x1cb   :  { %v279_v34 = vmax.f32 %v273_v32, 0.0 }
 0x1cc   :  { %v275_v35 = vpop.f32.mrf.mxu1 }
 0x1cd   :  { %281 = vst [vmem:[%s496_s5] sm:$0xff] %v279_v34  ;;  %v276_v36 = vadd.f32 %v298_v30, %v275_v35 }
 0x1ce   :  { %v364_v37 = vpop.f32.mrf.mxu1 }
 0x1cf   :  { %v280_v38 = vmax.f32 %v276_v36, 0.0 }
 0x1d1   :  { %282 = vst [vmem:[%s496_s5 + $0x8] sm:$0xff] %v280_v38 }
 0x1d2   :  { %287 = vsyncpa [#allocation3], 1 }
 0x1d3   :  { %288 = vsyncpa [#allocation5], 1 }

</bundles_post_ra>
